<compile_context>
chip_gen: v6e
topology: v6e:2x2x1
jax: 0.10.0
libtpu: 0.0.40
codegen_flags: <defaults>
</compile_context>

<pallas_src>
import math

import numpy as np

import jax
import jax.numpy as jnp
from jax.experimental import pallas as pl
from jax.experimental.pallas import tpu as pltpu

_PI = math.pi


def _param_groups(num_params_to_predict: int):
    if num_params_to_predict == 9:
        return dict(psi=[0, 3, 6], theta=[1, 4, 7], delta=[], mu=[2, 5, 8])
    if num_params_to_predict == 12:
        return dict(psi=[0, 4, 8], theta=[1, 5, 9], delta=[2, 6, 10],
                    mu=[3, 7, 11])
    raise ValueError("num_params_to_predict must be 9 or 12")


def _column_scale_offset(num_params: int, lanes: int):
    """Per-lane-column scale/offset for the dense flat slab (C % P == 0)."""
    groups = _param_groups(num_params)
    pidx = np.arange(lanes) % num_params
    scale = np.ones((lanes,), np.float32)
    offset = np.zeros((lanes,), np.float32)
    for j in groups["psi"] + groups["delta"]:      # (x + pi/2) / pi
        scale[pidx == j] = 1.0 / _PI
        offset[pidx == j] = 0.5
    for j in groups["theta"]:                      # x / (pi/2)
        scale[pidx == j] = 2.0 / _PI
    return (jnp.asarray(scale.reshape(1, lanes)),
            jnp.asarray(offset.reshape(1, lanes)))


def _make_kernel(lanes: int, tile_rows: int, num_tiles: int, n_valid: int,
                 needs_mask: bool):
    # Number of valid (non-padded, in-range) elements inside the last tile.
    last_tile_limit = n_valid - (num_tiles - 1) * tile_rows * lanes

    def kernel(scale_ref, offset_ref, pred_ref, true_ref, out_ref):
        i = pl.program_id(0)

        scale = scale_ref[...]        # (1, C) -> broadcasts over sublanes
        offset = offset_ref[...]

        p = pred_ref[...] * scale + offset
        t = true_ref[...] * scale + offset

        # BCE with PyTorch's clamp of the log terms at -100.
        log_p = jnp.maximum(jnp.log(p), -100.0)
        log_1mp = jnp.maximum(jnp.log(1.0 - p), -100.0)
        loss = -(t * log_p + (1.0 - t) * log_1mp)

        if needs_mask:
            # Only the last tile can contain padded / out-of-range elements.
            @pl.when(i < num_tiles - 1)
            def _():
                out_ref[...] = jnp.sum(loss).reshape(1, 1, 1)

            @pl.when(i == num_tiles - 1)
            def _():
                row = jax.lax.broadcasted_iota(jnp.int32, (tile_rows, 1), 0)
                col = jax.lax.broadcasted_iota(jnp.int32, (1, lanes), 1)
                flat = row * lanes + col                       # (tile_rows, C)
                masked = jnp.where(flat < last_tile_limit, loss, 0.0)
                out_ref[...] = jnp.sum(masked).reshape(1, 1, 1)
        else:
            out_ref[...] = jnp.sum(loss).reshape(1, 1, 1)

    return kernel


def parameter_based_loss(pred_parameters, true_parameters,
                         num_params_to_predict: int = 9,
                         max_block_rows: int | None = None):
    """Mean BCE over normalized parameters (ParameterBasedLoss.forward)."""
    pred = jnp.asarray(pred_parameters, jnp.float32)
    true = jnp.asarray(true_parameters, jnp.float32)
    B, P = pred.shape
    assert P == num_params_to_predict

    # Dense flat slab: C is a multiple of both 128 (lanes) and P (so the
    # parameter group is a pure function of the lane column).
    C = 128 * P
    N = B * P
    R = pl.cdiv(N, C)
    pad = R * C - N

    pred_f = pred.reshape(-1)          # row-major flatten: free
    true_f = true.reshape(-1)
    if pad:
        pred_f = jnp.pad(pred_f, (0, pad))
        true_f = jnp.pad(true_f, (0, pad))
    pred2d = pred_f.reshape(R, C)
    true2d = true_f.reshape(R, C)

    # Block sizing: ~4 MiB per input per grid step (multiple of 8 rows), or
    # the whole slab if it is smaller than that.
    if max_block_rows is None:
        max_block_rows = max(8, ((4 << 20) // (4 * C)) // 8 * 8)
    else:
        max_block_rows = max(8, (max_block_rows // 8) * 8)
    if R <= max_block_rows:
        tile_rows, num_tiles = R, 1
    else:
        tile_rows = max_block_rows
        num_tiles = pl.cdiv(R, tile_rows)

    needs_mask = (N != num_tiles * tile_rows * C)
    scale_col, offset_col = _column_scale_offset(P, C)
    kernel = _make_kernel(C, tile_rows, num_tiles, N, needs_mask)

    # 2 inputs x 2 pipeline buffers x block, plus slack; raise v5e's 16 MiB
    # scoped default, stay inside v7x's 64 MiB physical VMEM.
    block_bytes = tile_rows * C * 4
    vmem_limit = int(min(64 * 1024 * 1024,
                         max(32 * 1024 * 1024, 5 * block_bytes)))

    partials = pl.pallas_call(
        kernel,
        out_shape=jax.ShapeDtypeStruct((num_tiles, 1, 1), jnp.float32),
        grid=(num_tiles,),
        in_specs=[
            pl.BlockSpec((1, C), lambda i: (0, 0)),           # scale (const)
            pl.BlockSpec((1, C), lambda i: (0, 0)),           # offset (const)
            pl.BlockSpec((tile_rows, C), lambda i: (i, 0)),   # pred slab
            pl.BlockSpec((tile_rows, C), lambda i: (i, 0)),   # true slab
        ],
        out_specs=pl.BlockSpec((1, 1, 1), lambda i: (i, 0, 0)),
        compiler_params=pltpu.CompilerParams(
            dimension_semantics=("parallel",),
            vmem_limit_bytes=vmem_limit),
    )(scale_col, offset_col, pred2d, true2d)

    # Tiny final reduction + mean scaling in plain JAX (num_tiles elements).
    return jnp.sum(partials) * (1.0 / float(B * P))


# ----------------------------- reference / test -----------------------------

def _reference_loss(pred, true, num_params_to_predict=9):
    groups = _param_groups(num_params_to_predict)
    P = num_params_to_predict
    scale = jnp.ones((P,), jnp.float32)
    offset = jnp.zeros((P,), jnp.float32)
    for i in groups["psi"] + groups["delta"]:
        scale = scale.at[i].set(1.0 / _PI)
        offset = offset.at[i].set(0.5)
    for i in groups["theta"]:
        scale = scale.at[i].set(2.0 / _PI)
    p = pred * scale + offset
    t = true * scale + offset
    log_p = jnp.maximum(jnp.log(p), -100.0)
    log_1mp = jnp.maximum(jnp.log(1.0 - p), -100.0)
    return jnp.mean(-(t * log_p + (1.0 - t) * log_1mp))


def _sample_params(key, batch, num_params=9):
    # Sample parameters in their "physical" ranges so normalized values lie
    # in [0, 1] (as BCELoss requires):
    #   psi/delta in [-pi/2, pi/2], theta in [0, pi/2], mu in (0, 1).
    groups = _param_groups(num_params)
    k_psi, k_theta, k_delta, k_mu = jax.random.split(key, 4)
    x = jnp.zeros((batch, num_params), jnp.float32)
    psi = jax.random.uniform(k_psi, (batch, len(groups["psi"])),
                             minval=-_PI / 2, maxval=_PI / 2)
    theta = jax.random.uniform(k_theta, (batch, len(groups["theta"])),
                               minval=0.0, maxval=_PI / 2)
    mu = jax.random.uniform(k_mu, (batch, len(groups["mu"])),
                            minval=1e-3, maxval=1.0 - 1e-3)
    x = x.at[:, jnp.array(groups["psi"])].set(psi)
    x = x.at[:, jnp.array(groups["theta"])].set(theta)
    x = x.at[:, jnp.array(groups["mu"])].set(mu)
    if groups["delta"]:
        delta = jax.random.uniform(k_delta, (batch, len(groups["delta"])),
                                   minval=-_PI / 2, maxval=_PI / 2)
        x = x.at[:, jnp.array(groups["delta"])].set(delta)
    return x


if __name__ == "__main__":
    key = jax.random.PRNGKey(0)
    k1, k2, k3, k4, k5, k6, k7, k8 = jax.random.split(key, 8)

    # Case 1: tiny batch (single block, in-row padding masked).
    b1, p1 = 2, 9
    pred1, true1 = _sample_params(k1, b1, p1), _sample_params(k2, b1, p1)
    out1 = parameter_based_loss(pred1, true1, p1)
    jax.block_until_ready(out1)
    ref1 = _reference_loss(pred1, true1, p1)
    assert jnp.allclose(out1, ref1, rtol=1e-4, atol=1e-6), (out1, ref1)

    # Case 2: batch not a multiple of 128, single block.
    b2 = 300
    pred2, true2 = _sample_params(k3, b2, p1), _sample_params(k4, b2, p1)
    out2 = parameter_based_loss(pred2, true2, p1)
    jax.block_until_ready(out2)
    ref2 = _reference_loss(pred2, true2, p1)
    assert jnp.allclose(out2, ref2, rtol=1e-4, atol=1e-6), (out2, ref2)

    # Case 3: multi-tile "parallel" grid with ragged last tile (small block
    # rows forced so the tiled path is exercised at small sizes).
    b3 = 3000
    pred3, true3 = _sample_params(k5, b3, p1), _sample_params(k6, b3, p1)
    out3 = parameter_based_loss(pred3, true3, p1, max_block_rows=8)
    jax.block_until_ready(out3)
    ref3 = _reference_loss(pred3, true3, p1)
    assert jnp.allclose(out3, ref3, rtol=1e-4, atol=1e-6), (out3, ref3)

    # Case 4: 12-parameter variant (delta group exercised).
    b4, p4 = 70, 12
    pred4, true4 = _sample_params(k7, b4, p4), _sample_params(k8, b4, p4)
    out4 = parameter_based_loss(pred4, true4, p4)
    jax.block_until_ready(out4)
    ref4 = _reference_loss(pred4, true4, p4)
    assert jnp.allclose(out4, ref4, rtol=1e-4, atol=1e-6), (out4, ref4)

    print("KERNEL_OK")
</pallas_src>

<mosaic_0001>
module attributes {stable_mosaic.version = 11 : i64} {
  func.func @kernel(%arg0: i32, %arg1: memref<1x1152xf32, #tpu.memory_space<vmem>>, %arg2: memref<1x1152xf32, #tpu.memory_space<vmem>>, %arg3: memref<1x1152xf32, #tpu.memory_space<vmem>>, %arg4: memref<1x1152xf32, #tpu.memory_space<vmem>>, %arg5: memref<1x1x1xf32, #tpu.memory_space<vmem>>) attributes {dimension_semantics = [#tpu.dimension_semantics<parallel>], iteration_bounds = array<i64: 1>, scalar_prefetch = 0 : i64, scratch_operands = 0 : i64, tpu.core_type = #tpu.core_type<tc>, window_params = [{pipeline_mode = #tpu.pipeline_mode<synchronous>, transform_indices = @transform_0, window_bounds = array<i64: 1, 1152>}, {pipeline_mode = #tpu.pipeline_mode<synchronous>, transform_indices = @transform_1, window_bounds = array<i64: 1, 1152>}, {transform_indices = @transform_2, window_bounds = array<i64: 1, 1152>}, {transform_indices = @transform_3, window_bounds = array<i64: 1, 1152>}, {transform_indices = @transform_4, window_bounds = array<i64: 1, 1, 1>}]} {
    %c0 = arith.constant 0 : index
    %c0_0 = arith.constant 0 : index
    %0 = vector.load %arg1[%c0, %c0_0] : memref<1x1152xf32, #tpu.memory_space<vmem>>, vector<1x1152xf32>
    %c0_1 = arith.constant 0 : index
    %c0_2 = arith.constant 0 : index
    %1 = vector.load %arg2[%c0_1, %c0_2] : memref<1x1152xf32, #tpu.memory_space<vmem>>, vector<1x1152xf32>
    %c0_3 = arith.constant 0 : index
    %c0_4 = arith.constant 0 : index
    %2 = vector.load %arg3[%c0_3, %c0_4] : memref<1x1152xf32, #tpu.memory_space<vmem>>, vector<1x1152xf32>
    %3 = arith.mulf %2, %0 : vector<1x1152xf32>
    %4 = arith.addf %3, %1 : vector<1x1152xf32>
    %c0_5 = arith.constant 0 : index
    %c0_6 = arith.constant 0 : index
    %5 = vector.load %arg4[%c0_5, %c0_6] : memref<1x1152xf32, #tpu.memory_space<vmem>>, vector<1x1152xf32>
    %6 = arith.mulf %5, %0 : vector<1x1152xf32>
    %7 = arith.addf %6, %1 : vector<1x1152xf32>
    %8 = math.log %4 : vector<1x1152xf32>
    %cst = arith.constant -1.000000e+02 : f32
    %9 = vector.broadcast %cst : f32 to vector<1x1152xf32>
    %10 = arith.maximumf %8, %9 : vector<1x1152xf32>
    %cst_7 = arith.constant 1.000000e+00 : f32
    %11 = vector.broadcast %cst_7 : f32 to vector<1x1152xf32>
    %12 = arith.subf %11, %4 : vector<1x1152xf32>
    %13 = math.log %12 : vector<1x1152xf32>
    %cst_8 = arith.constant -1.000000e+02 : f32
    %14 = vector.broadcast %cst_8 : f32 to vector<1x1152xf32>
    %15 = arith.maximumf %13, %14 : vector<1x1152xf32>
    %16 = arith.mulf %7, %10 : vector<1x1152xf32>
    %cst_9 = arith.constant 1.000000e+00 : f32
    %17 = vector.broadcast %cst_9 : f32 to vector<1x1152xf32>
    %18 = arith.subf %17, %7 : vector<1x1152xf32>
    %19 = arith.mulf %18, %15 : vector<1x1152xf32>
    %20 = arith.addf %16, %19 : vector<1x1152xf32>
    %cst_10 = arith.constant 0.000000e+00 : f32
    %21 = vector.broadcast %cst_10 : f32 to vector<1x1152xf32>
    %22 = arith.subf %21, %20 : vector<1x1152xf32>
    %c0_i32 = arith.constant 0 : i32
    %23 = arith.cmpi slt, %arg0, %c0_i32 : i32
    %24 = arith.extui %23 : i1 to i32
    %c0_i32_11 = arith.constant 0 : i32
    %25 = arith.cmpi ne, %24, %c0_i32_11 : i32
    scf.if %25 {
      %29 = vector.shape_cast %22 : vector<1x1152xf32> to vector<1x1x1152xf32>
      %cst_14 = arith.constant dense<0.000000e+00> : vector<1xf32>
      %30 = vector.multi_reduction <add>, %29, %cst_14 [1, 2] : vector<1x1x1152xf32> to vector<1xf32>
      %31 = vector.shape_cast %30 : vector<1xf32> to vector<1x1x1xf32>
      %32 = vector.extract %31[0, 0, 0] : f32 from vector<1x1x1xf32>
      %33 = vector.broadcast %32 : f32 to vector<1x1x1xf32>
      %c0_15 = arith.constant 0 : index
      %c0_16 = arith.constant 0 : index
      %c0_17 = arith.constant 0 : index
      %34 = vector.load %arg5[%c0_15, %c0_16, %c0_17] : memref<1x1x1xf32, #tpu.memory_space<vmem>>, vector<1x1x1xf32>
      tpu.vector_store %arg5[%c0_15, %c0_16, %c0_17], %33 {strides = array<i32>} : memref<1x1x1xf32, #tpu.memory_space<vmem>>, vector<1x1x1xf32>,
    } else {
    }
    %c0_i32_12 = arith.constant 0 : i32
    %26 = arith.cmpi eq, %arg0, %c0_i32_12 : i32
    %27 = arith.extui %26 : i1 to i32
    %c0_i32_13 = arith.constant 0 : i32
    %28 = arith.cmpi ne, %27, %c0_i32_13 : i32
    scf.if %28 {
      %29 = tpu.iota {dimensions = array<i32: 0>} : vector<1x1xi32>
      %30 = tpu.iota {dimensions = array<i32: 1>} : vector<1x1152xi32>
      %c1152_i32 = arith.constant 1152 : i32
      %31 = vector.broadcast %c1152_i32 : i32 to vector<1x1xi32>
      %32 = arith.muli %29, %31 : vector<1x1xi32>
      %33 = vector.broadcast %32 : vector<1x1xi32> to vector<1x1152xi32>
      %34 = arith.addi %33, %30 : vector<1x1152xi32>
      %c18_i32 = arith.constant 18 : i32
      %35 = vector.broadcast %c18_i32 : i32 to vector<1x1152xi32>
      %36 = arith.cmpi slt, %34, %35 : vector<1x1152xi32>
      %cst_14 = arith.constant 0.000000e+00 : f32
      %37 = vector.broadcast %cst_14 : f32 to vector<1x1152xf32>
      %38 = arith.select %36, %22, %37 : vector<1x1152xi1>, vector<1x1152xf32>
      %39 = vector.shape_cast %38 : vector<1x1152xf32> to vector<1x1x1152xf32>
      %cst_15 = arith.constant dense<0.000000e+00> : vector<1xf32>
      %40 = vector.multi_reduction <add>, %39, %cst_15 [1, 2] : vector<1x1x1152xf32> to vector<1xf32>
      %41 = vector.shape_cast %40 : vector<1xf32> to vector<1x1x1xf32>
      %42 = vector.extract %41[0, 0, 0] : f32 from vector<1x1x1xf32>
      %43 = vector.broadcast %42 : f32 to vector<1x1x1xf32>
      %c0_16 = arith.constant 0 : index
      %c0_17 = arith.constant 0 : index
      %c0_18 = arith.constant 0 : index
      %44 = vector.load %arg5[%c0_16, %c0_17, %c0_18] : memref<1x1x1xf32, #tpu.memory_space<vmem>>, vector<1x1x1xf32>
      tpu.vector_store %arg5[%c0_16, %c0_17, %c0_18], %43 {strides = array<i32>} : memref<1x1x1xf32, #tpu.memory_space<vmem>>, vector<1x1x1xf32>,
    } else {
    }
    return
  }
  func.func @transform_0(%arg0: i32) -> (i32, i32) {
    %c0_i32 = arith.constant 0 : i32
    %c0_i32_0 = arith.constant 0 : i32
    %c0_i32_1 = arith.constant 0 : i32
    return %c0_i32, %c0_i32_0 : i32, i32
  }
  func.func @transform_1(%arg0: i32) -> (i32, i32) {
    %c0_i32 = arith.constant 0 : i32
    %c0_i32_0 = arith.constant 0 : i32
    %c0_i32_1 = arith.constant 0 : i32
    return %c0_i32, %c0_i32_0 : i32, i32
  }
  func.func @transform_2(%arg0: i32) -> (i32, i32) {
    %c0_i32 = arith.constant 0 : i32
    %c0_i32_0 = arith.constant 0 : i32
    return %arg0, %c0_i32 : i32, i32
  }
  func.func @transform_3(%arg0: i32) -> (i32, i32) {
    %c0_i32 = arith.constant 0 : i32
    %c0_i32_0 = arith.constant 0 : i32
    return %arg0, %c0_i32 : i32, i32
  }
  func.func @transform_4(%arg0: i32) -> (i32, i32, i32) {
    %c0_i32 = arith.constant 0 : i32
    %c0_i32_0 = arith.constant 0 : i32
    %c0_i32_1 = arith.constant 0 : i32
    return %arg0, %c0_i32, %c0_i32_0 : i32, i32, i32
  }
}

</mosaic_0001>

<bundles_post_ra>
// kernel: tpu_custom_call.1
= control target key start
LH: loop header
LB: loop body
LE: loop exit
PB: predicated region body
PF: predicated region fallthrough
CT: control target
= control target key end

     0   :  { %9 = vsyncpa [#allocation3], 0  ;;  %s513_s0 = inlined_call_operand.hbm [shape: f32[1,1152], index: 0, kind: input, shape index: {}]   ;;  %s514_s1 = inlined_call_operand.hbm [shape: f32[1,1152], index: 1, kind: input, shape index: {}]   ;;  %s515_s2 = inlined_call_operand.hbm [shape: f32[1,1152], index: 2, kind: input, shape index: {}]   ;;  %s516_s3 = inlined_call_operand.hbm [shape: f32[1,1152], index: 3, kind: input, shape index: {}]   ;;  %s517_s4 = inlined_call_operand.hbm [shape: f32[1,1,1], index: 4, kind: output, shape index: {}]  }
   0x1   :  { %10 = vsyncpa [#allocation6], 0 }
   0x2   :  { %11 = vsyncpa [#allocation9], 0 }
   0x3   :  { %12 = vsyncpa [#allocation4], 0  ;;  %s447_s15 = smov [#allocation5]   ;;  %s448_s17 = smov [#allocation2]  }
   0x4   :  { %s29_s16 = sshll.u32 %s447_s15, 4  ;;  %s19_s18 = sshll.u32 %s448_s17, 4  ;;  %s30_s16 = int_to_ptr.vmem [resolvable:$true] %s29_s16  ;;  %s20_s18 = int_to_ptr.vmem [resolvable:$true] %s19_s18 }
   0x5   :  { %s347_s19 = scalar_lea.vmem %s30_s16, 144  ;;  %s351_s20 = scalar_lea.vmem %s30_s16, 160 }
   0x6   :  { %p348_p0 = scmp.ne.s32.totalorder %s30_s16, %s347_s19  ;;  %p352_p1 = scmp.lt.s32.totalorder %s30_s16, %s30_s16 }
   0x7   :  { %p353_p2 = scmp.lt.s32.totalorder %s351_s20, %s347_s19 }
   0x9   :  { %p354_p3 = por %p353_p2, %p352_p1 }
   0xb   :  { %p355_p4 = pnand %p354_p3, %p348_p0 }
   0xd   :  { %358 = shalt.err (!%p355_p4)
}
   0xe   :  { %32 = dma.hbm_to_vmem [thread:$0]  %s514_s1, 144, %s30_s16, [#allocation6]  }
   0xf   :  { %s367_s23 = scalar_lea.vmem %s20_s18, 144  ;;  %s371_s24 = scalar_lea.vmem %s20_s18, 160 }
  0x10   :  { %p368_p5 = scmp.ne.s32.totalorder %s20_s18, %s367_s23  ;;  %p372_p6 = scmp.lt.s32.totalorder %s20_s18, %s20_s18 }
  0x11   :  { %p373_p7 = scmp.lt.s32.totalorder %s371_s24, %s367_s23 }
  0x13   :  { %p374_p8 = por %p373_p7, %p372_p6 }
  0x15   :  { %p375_p9 = pnand %p374_p8, %p368_p5 }
  0x17   :  { %378 = shalt.err (!%p375_p9)
}
  0x18   :  { %22 = dma.hbm_to_vmem [thread:$0]  %s513_s0, 144, %s20_s18, [#allocation3]  }
  0x19   :  { %s449_s27 = smov [#allocation7]   ;;  %s450_s29 = smov [#allocation8]  }
  0x1a   :  { %s39_s28 = sshll.u32 %s449_s27, 4  ;;  %s49_s30 = sshll.u32 %s450_s29, 4  ;;  %s40_s28 = int_to_ptr.vmem [resolvable:$true] %s39_s28  ;;  %s50_s30 = int_to_ptr.vmem [resolvable:$true] %s49_s30 }
  0x1b   :  { %s387_s5 = scalar_lea.vmem %s40_s28, 144  ;;  %s391_s1 = scalar_lea.vmem %s40_s28, 160 }
  0x1c   :  { %p388_p10 = scmp.ne.s32.totalorder %s40_s28, %s387_s5  ;;  %p392_p11 = scmp.lt.s32.totalorder %s40_s28, %s40_s28 }
  0x1d   :  { %p393_p12 = scmp.lt.s32.totalorder %s391_s1, %s387_s5 }
  0x1f   :  { %p394_p13 = por %p393_p12, %p392_p11 }
  0x21   :  { %p395_p0 = pnand %p394_p13, %p388_p10 }
  0x23   :  { %398 = shalt.err (!%p395_p0)
}
  0x24   :  { %42 = dma.hbm_to_vmem [thread:$0]  %s515_s2, 144, %s40_s28, [#allocation6]  }
  0x25   :  { %s407_s8 = scalar_lea.vmem %s50_s30, 144  ;;  %s411_s0 = scalar_lea.vmem %s50_s30, 160 }
  0x26   :  { %p408_p1 = scmp.ne.s32.totalorder %s50_s30, %s407_s8  ;;  %p412_p2 = scmp.lt.s32.totalorder %s50_s30, %s50_s30 }
  0x27   :  { %p413_p3 = scmp.lt.s32.totalorder %s411_s0, %s407_s8 }
  0x29   :  { %p414_p4 = por %p413_p3, %p412_p2 }
  0x2b   :  { %p415_p5 = pnand %p414_p4, %p408_p1 }
  0x2d   :  { %418 = shalt.err (!%p415_p5)
}
  0x2e   :  { %52 = dma.hbm_to_vmem [thread:$0]  %s516_s3, 144, %s50_s30, [#allocation9]  }
  0x2f   :  { %439 = dma.done.wait [#allocation3], 144  }
  0x30   :  { %440 = vsyncadd [#allocation3], 4294967152 }
  0x31   :  { %441 = dma.done.wait [#allocation6], 288  }
  0x32   :  { %442 = vsyncadd [#allocation6], 4294967008 }
  0x33   :  { %443 = dma.done.wait [#allocation9], 144  }
  0x34   :  { %444 = vsyncadd [#allocation9], 4294967152  ;;  %v65_v0 = vld [vmem:[#allocation2] sm:$0xff]  ;;  %v66_v1 = vld [vmem:[#allocation2 + $0x8] sm:$0x1]  ;;  %v190_v14 = vlaneseq  ;;  %vm277_vm0 = vcmask 1040384  }
  0x35   :  { %v67_v2 = vld [vmem:[#allocation5] sm:$0xff]  ;;  %v68_v3 = vld [vmem:[#allocation5 + $0x8] sm:$0x1]  ;;  %v69_v4 = vld [vmem:[#allocation7] sm:$0xff]  ;;  %s451_s2 = smov [#allocation10]   ;;  %vm305_vm10 = vcmask 0  }
  0x36   :  { %v70_v5 = vld [vmem:[#allocation7 + $0x8] sm:$0x1]  ;;  %v71_v6 = vmul.f32 %v69_v4, %v65_v0  ;;  %v75_v12 = vld [vmem:[#allocation8] sm:$0xff]  ;;  %v76_v13 = vld [vmem:[#allocation8 + $0x8] sm:$0x1]  ;;  %v193_v17 = vand.u32 127, %v190_v14 }
  0x37   :  { %v72_v7 = vmul.f32 %v70_v5, %v66_v1  ;;  %v77_v15 = vmul.f32 %v75_v12, %v65_v0  ;;  %v78_v16 = vmul.f32 %v76_v13, %v66_v1  ;;  %v489_v19 = vshrl.u32 %v190_v14, 7  ;;  %s313_s3 = sshll.u32 %s451_s2, 4  ;;  %s314_s3 = int_to_ptr.vmem [resolvable:$true] %s313_s3 }
  0x38   :  { %v73_v8 = vadd.f32 %v71_v6, %v67_v2  ;;  %v194_v26 = vadd.s32 128, %v193_v17  ;;  %v195_v27 = vadd.s32 256, %v193_v17  ;;  %v196_v36 = vadd.s32 384, %v193_v17  ;;  %s419_s12 = scalar_lea.vmem %s314_s3, 16  ;;  %s423_s13 = scalar_lea.vmem %s314_s3, 32 }
  0x39   :  { %v74_v9 = vadd.f32 %v72_v7, %v68_v3  ;;  %v79_v18 = vadd.f32 %v77_v15, %v67_v2  ;;  %v80_v21 = vadd.f32 %v78_v16, %v68_v3  ;;  %v202_v32 = vmul.u32 1152, %v489_v19  ;;  %p420_p6 = scmp.ne.s32.totalorder %s314_s3, %s419_s12  ;;  %p424_p7 = scmp.lt.s32.totalorder %s314_s3, %s314_s3 }
  0x3a   :  { %331 = vlog2.f32 %v73_v8  ;;  %v87_v10 = vsub.f32 1.0, %v73_v8  ;;  %v197_v40 = vadd.s32 512, %v193_v17  ;;  %v198_v41 = vadd.s32 640, %v193_v17  ;;  %p425_p8 = scmp.lt.s32.totalorder %s423_s13, %s419_s12 }
  0x3b   :  { %v88_v11 = vsub.f32 1.0, %v74_v9  ;;  %333 = vlog2.f32 %v74_v9  ;;  %v97_v31 = vsub.f32 1.0, %v79_v18  ;;  %v98_v35 = vsub.f32 1.0, %v80_v21 }
  0x3c   :  { %335 = vlog2.f32 %v87_v10  ;;  %v203_v43 = vadd.s32 %v202_v32, %v193_v17  ;;  %v204_v44 = vadd.s32 %v202_v32, %v194_v26  ;;  %v225_v45 = vsub.s32 0, %v489_v19  ;;  %p426_p9 = por %p425_p8, %p424_p7 }
  0x3d   :  { %337 = vlog2.f32 %v88_v11  ;;  %v205_v48 = vadd.s32 %v202_v32, %v195_v27  ;;  %v206_v49 = vadd.s32 %v202_v32, %v196_v36  ;;  %v229_v51 = vsub.s32 1, %v489_v19 }
  0x3e   :  { %v233_v52 = vsub.s32 2, %v489_v19  ;;  %v237_v53 = vsub.s32 3, %v489_v19  ;;  %v199_v54 = vadd.s32 768, %v193_v17  ;;  %v200_v55 = vadd.s32 896, %v193_v17  ;;  %p427_p10 = pnand %p426_p9, %p420_p6 }
  0x3f   :  { %v207_v56 = vadd.s32 %v202_v32, %v197_v40  ;;  %v241_v57 = vsub.s32 4, %v489_v19  ;;  %v208_v59 = vadd.s32 %v202_v32, %v198_v41  ;;  %vm212_vm1 = vcmp.lt.s32.totalorder %v203_v43, 18 }
  0x40   :  { %vm213_vm2 = vcmp.lt.s32.totalorder %v204_v44, 18  ;;  %vm214_vm3 = vcmp.lt.s32.totalorder %v205_v48, 18  ;;  %vm215_vm4 = vcmp.lt.s32.totalorder %v206_v49, 18  ;;  %v245_v61 = vsub.s32 5, %v489_v19 }
  0x41   :  { %v201_v2 = vadd.s32 1024, %v193_v17  ;;  %v209_v3 = vadd.s32 %v202_v32, %v199_v54  ;;  %v249_v5 = vsub.s32 6, %v489_v19  ;;  %vm216_vm5 = vcmp.lt.s32.totalorder %v207_v56, 18 }
  0x42   :  { %v210_v9 = vadd.s32 %v202_v32, %v200_v55  ;;  %v253_v11 = vsub.s32 7, %v489_v19  ;;  %vm217_vm6 = vcmp.lt.s32.totalorder %v208_v59, 18 }
  0x43   :  { %vm218_vm7 = vcmp.lt.s32.totalorder %v209_v3, 18 }
  0x44   :  { %vm219_vm8 = vcmp.lt.s32.totalorder %v210_v9, 18 }
  0x47   :  { %v332_v20 = vpop.eup %331 }
  0x48   :  { %v334_v22 = vpop.eup %333  ;;  %v82_v23 = vmul.f32 0.6931472, %v332_v20 }
  0x49   :  { %v336_v24 = vpop.eup %335  ;;  %v84_v25 = vmul.f32 0.6931472, %v334_v22 }
  0x4a   :  { %v338_v28 = vpop.eup %337  ;;  %v85_v29 = vmax.f32 %v82_v23, -100.0  ;;  %v90_v30 = vmul.f32 0.6931472, %v336_v24 }
  0x4b   :  { %v86_v33 = vmax.f32 %v84_v25, -100.0  ;;  %v92_v34 = vmul.f32 0.6931472, %v338_v28 }
  0x4c   :  { %v93_v37 = vmax.f32 %v90_v30, -100.0  ;;  %v95_v38 = vmul.f32 %v85_v29, %v79_v18 }
  0x4d   :  { %v94_v39 = vmax.f32 %v92_v34, -100.0  ;;  %v96_v46 = vmul.f32 %v86_v33, %v80_v21  ;;  %v211_v21 = vadd.s32 %v202_v32, %v201_v2 }
  0x4e   :  { %v99_v42 = vmul.f32 %v97_v31, %v93_v37 }
  0x4f   :  { %v100_v47 = vmul.f32 %v98_v35, %v94_v39  ;;  %vm220_vm9 = vcmp.lt.s32.totalorder %v211_v21, 18 }
  0x50   :  { %v101_v50 = vadd.f32 %v99_v42, %v95_v38 }
  0x51   :  { %v102_v60 = vadd.f32 %v100_v47, %v96_v46 }
  0x52   :  { %v103_v58 = vsub.f32 0.0, %v101_v50 }
  0x53   :  { %v104_v13 = vsub.f32 0.0, %v102_v60 }
  0x54   :  { %v226_v62 = vrot.slane %v103_v58, %v225_v45  ;;  %v230_v63 = vrot.slane %v103_v58, %v229_v51  ;;  %v234_v0 = vrot.slane %v103_v58, %v233_v52  ;;  %v238_v1 = vrot.slane %v103_v58, %v237_v53 }
  0x55   :  { %v242_v4 = vrot.slane %v103_v58, %v241_v57  ;;  %v246_v10 = vrot.slane %v103_v58, %v245_v61  ;;  %v250_v16 = vrot.slane %v103_v58, %v249_v5  ;;  %v254_v23 = vrot.slane %v103_v58, %v253_v11 }
  0x56   :  { %v268_v6 = vsel %vm212_vm1, %v226_v62, 0.0  ;;  %v269_v7 = vsel %vm213_vm2, %v230_v63, 0.0  ;;  %v270_v8 = vsel %vm214_vm3, %v234_v0, 0.0  ;;  %v271_v12 = vsel %vm215_vm4, %v238_v1, 0.0 }
  0x57   :  { %v278_v14 = vsel %vm277_vm0, %v268_v6, 0.0  ;;  %v279_v15 = vsel %vm277_vm0, %v269_v7, 0.0  ;;  %v272_v17 = vsel %vm216_vm5, %v242_v4, 0.0  ;;  %v281_v20 = vsel %vm277_vm0, %v270_v8, 0.0 }
  0x58   :  { %v280_v18 = vadd.f32 %v279_v15, %v278_v14  ;;  %v283_v22 = vsel %vm277_vm0, %v271_v12, 0.0  ;;  %v273_v24 = vsel %vm217_vm6, %v246_v10, 0.0  ;;  %v285_v25 = vsel %vm277_vm0, %v272_v17, 0.0 }
  0x59   :  { %v258_v26 = vrot.slane %v104_v13, %v225_v45  ;;  %v274_v27 = vsel %vm218_vm7, %v250_v16, 0.0  ;;  %v287_v29 = vsel %vm277_vm0, %v273_v24, 0.0  ;;  %v275_v30 = vsel %vm219_vm8, %v254_v23, 0.0 }
  0x5a   :  { %v282_v19 = vadd.f32 %v281_v20, %v280_v18  ;;  %v289_v33 = vsel %vm277_vm0, %v274_v27, 0.0  ;;  %v291_v35 = vsel %vm277_vm0, %v275_v30, 0.0 }
  0x5b   :  { %v276_v32 = vsel %vm220_vm9, %v258_v26, 0.0 }
  0x5c   :  { %v284_v28 = vadd.f32 %v283_v22, %v282_v19  ;;  %v293_v37 = vsel %vm277_vm0, %v276_v32, 0.0 }
  0x5e   :  { %v286_v31 = vadd.f32 %v285_v25, %v284_v28 }
  0x60   :  { %v288_v34 = vadd.f32 %v287_v29, %v286_v31 }
  0x62   :  { %v290_v36 = vadd.f32 %v289_v33, %v288_v34 }
  0x64   :  { %v292_v38 = vadd.f32 %v291_v35, %v290_v36 }
  0x66   :  { %v294_v39 = vadd.f32 %v293_v37, %v292_v38 }
  0x68   :  { %295 = vadd.xlane.f32.xlu0 %v294_v39 }
  0xf1   :  { %v296_v40 = vpop.xlane.xlu0 %295 }
  0xf2   :  { %v297_v41 = vrot.slane %v296_v40, 4 }
  0xf4   :  { %v298_v42 = vadd.f32 %v297_v41, %v296_v40 }
  0xf6   :  { %v299_v43 = vrot.slane %v298_v42, 2 }
  0xf8   :  { %v300_v44 = vadd.f32 %v299_v43, %v298_v42 }
  0xfa   :  { %v301_v45 = vrot.slane %v300_v44, 1 }
  0xfc   :  { %v302_v46 = vadd.f32 %v301_v45, %v300_v44 }
  0xfe   :  { %324 = vpush %v302_v46 }
 0x12f   :  { %s325_s11 = spop %324 }
 0x130   :  { %v304_v47 = vstv %s325_s11 }
 0x131   :  { %306 = vst.msk [vmem:[#allocation10] sm:$0x1] %vm305_vm10, %v304_v47 }
 0x132   :  { %430 = shalt.err (!%p427_p10)
}
 0x133   :  { %316 = dma.vmem_to_hbm [thread:$0]  %s314_s3, 16, %s517_s4, [#allocation4]  }
 0x134   :  { %445 = dma.done.wait [#allocation4], 16  }
 0x135   :  { %446 = vsyncadd [#allocation4], 4294967280 }
 0x136   :  { %320 = vsyncpa [#allocation3], 1 }
 0x137   :  { %321 = vsyncpa [#allocation6], 1 }
 0x138   :  { %322 = vsyncpa [#allocation9], 1 }
 0x139   :  { %323 = vsyncpa [#allocation4], 1 }

</bundles_post_ra>
